<compile_context>
chip_gen: v7x
topology: tpu7x:2x2x1
jax: 0.10.0
libtpu: 0.0.40
codegen_flags: <defaults>
</compile_context>

<pallas_src>
import math
from functools import partial

import jax
import jax.numpy as jnp
from jax.experimental import pallas as pl
from jax.experimental.pallas import tpu as pltpu

LANE = 128          # TPU lane width; conv/fc output channels are padded to it
BN_EPS = 1e-5


def _rup(x, m):
    return (x + m - 1) // m * m


# ---------------------------------------------------------------------------
# Pallas kernels
# ---------------------------------------------------------------------------

def _bn_relu_kernel(x_ref, g_ref, b_ref, o_ref):
    """Training-mode BatchNorm (batch stats over rows) + ReLU; bf16 output."""
    x = x_ref[...]
    mean = jnp.mean(x, axis=0, keepdims=True)
    d = x - mean
    var = jnp.mean(d * d, axis=0, keepdims=True)
    y = d * jax.lax.rsqrt(var + BN_EPS) * g_ref[...] + b_ref[...]
    o_ref[...] = jnp.maximum(y, 0.0).astype(o_ref.dtype)


def _conv_bnrelu_kernel(p_ref, w_ref, g_ref, b_ref, o_ref):
    """conv-as-matmul (bf16 operands, f32 acc) + BN(batch stats) + ReLU."""
    y = jnp.dot(p_ref[...], w_ref[...], preferred_element_type=jnp.float32)
    mean = jnp.mean(y, axis=0, keepdims=True)
    d = y - mean
    var = jnp.mean(d * d, axis=0, keepdims=True)
    z = d * jax.lax.rsqrt(var + BN_EPS) * g_ref[...] + b_ref[...]
    o_ref[...] = jnp.maximum(z, 0.0).astype(o_ref.dtype)


def _conv_add_kernel(p_ref, w_ref, r_ref, o_ref):
    """conv-as-matmul + residual add (residual aliased to the output)."""
    o_ref[...] = (jnp.dot(p_ref[...], w_ref[...],
                          preferred_element_type=jnp.float32) + r_ref[...])


def _conv_add_sc_kernel(p_ref, w_ref, psc_ref, wsc_ref, o_ref):
    """3x3 conv + 1x1 shortcut conv + add, all in one kernel."""
    y = jnp.dot(p_ref[...], w_ref[...], preferred_element_type=jnp.float32)
    y = y + jnp.dot(psc_ref[...], wsc_ref[...],
                    preferred_element_type=jnp.float32)
    o_ref[...] = y


def _conv_plain_kernel(p_ref, w_ref, o_ref):
    o_ref[...] = jnp.dot(p_ref[...], w_ref[...],
                         preferred_element_type=jnp.float32)


def _head_kernel(x_ref, pool_ref, g_ref, b_ref, w_ref, bias_ref,
                 emb_ref, logit_ref):
    """BN + ReLU + global avg-pool (as matmul) + FC (+bias) in one kernel."""
    x = x_ref[...]
    mean = jnp.mean(x, axis=0, keepdims=True)
    d = x - mean
    var = jnp.mean(d * d, axis=0, keepdims=True)
    z = jnp.maximum(d * jax.lax.rsqrt(var + BN_EPS) * g_ref[...] + b_ref[...],
                    0.0)
    emb = jnp.dot(pool_ref[...], z, preferred_element_type=jnp.float32)
    emb_ref[...] = emb
    logit_ref[...] = (jnp.dot(emb.astype(jnp.bfloat16), w_ref[...],
                              preferred_element_type=jnp.float32)
                      + bias_ref[...])


# ---------------------------------------------------------------------------
# pallas_call wrappers
# ---------------------------------------------------------------------------

def bn_relu(x, gamma, beta):
    """(N,H,W,C) f32 -> bf16 relu(batchnorm(x)), same shape."""
    N, H, W, C = x.shape
    y = pl.pallas_call(
        _bn_relu_kernel,
        out_shape=jax.ShapeDtypeStruct((N * H * W, C), jnp.bfloat16),
    )(x.reshape(N * H * W, C), gamma.reshape(1, C), beta.reshape(1, C))
    return y.reshape(N, H, W, C)


def conv_bnrelu(patches, w, gamma, beta):
    # Whole-tensor block: the BN epilogue needs full batch statistics.
    M = patches.shape[0]
    return pl.pallas_call(
        _conv_bnrelu_kernel,
        out_shape=jax.ShapeDtypeStruct((M, LANE), jnp.bfloat16),
    )(patches, w, gamma, beta)


def _m_tiles(M):
    return 2 if (M // 2) % 16 == 0 else 1


def conv_add(patches, w, res):
    M, K = patches.shape
    nt = _m_tiles(M)
    TM = M // nt
    return pl.pallas_call(
        _conv_add_kernel,
        out_shape=jax.ShapeDtypeStruct((M, LANE), jnp.float32),
        grid=(nt,),
        in_specs=[pl.BlockSpec((TM, K), lambda i: (i, 0)),
                  pl.BlockSpec((K, LANE), lambda i: (0, 0)),
                  pl.BlockSpec((TM, LANE), lambda i: (i, 0))],
        out_specs=pl.BlockSpec((TM, LANE), lambda i: (i, 0)),
        input_output_aliases={2: 0},
        compiler_params=pltpu.CompilerParams(
            dimension_semantics=("parallel",)),
    )(patches, w, res)


def conv_add_sc(patches, w, psc, wsc):
    M, K = patches.shape
    Ksc = psc.shape[1]
    nt = _m_tiles(M)
    TM = M // nt
    return pl.pallas_call(
        _conv_add_sc_kernel,
        out_shape=jax.ShapeDtypeStruct((M, LANE), jnp.float32),
        grid=(nt,),
        in_specs=[pl.BlockSpec((TM, K), lambda i: (i, 0)),
                  pl.BlockSpec((K, LANE), lambda i: (0, 0)),
                  pl.BlockSpec((TM, Ksc), lambda i: (i, 0)),
                  pl.BlockSpec((Ksc, LANE), lambda i: (0, 0))],
        out_specs=pl.BlockSpec((TM, LANE), lambda i: (i, 0)),
        compiler_params=pltpu.CompilerParams(
            dimension_semantics=("parallel",)),
    )(patches, w, psc, wsc)


def conv_plain(patches, w):
    M, K = patches.shape
    nt = _m_tiles(M)
    TM = M // nt
    return pl.pallas_call(
        _conv_plain_kernel,
        out_shape=jax.ShapeDtypeStruct((M, LANE), jnp.float32),
        grid=(nt,),
        in_specs=[pl.BlockSpec((TM, K), lambda i: (i, 0)),
                  pl.BlockSpec((K, LANE), lambda i: (0, 0))],
        out_specs=pl.BlockSpec((TM, LANE), lambda i: (i, 0)),
        compiler_params=pltpu.CompilerParams(
            dimension_semantics=("parallel",)),
    )(patches, w)


# ---------------------------------------------------------------------------
# Glue (runs inside per-block jit, fused by XLA)
# ---------------------------------------------------------------------------

def im2col(x, ksize, stride, pad):
    """x: (N,H,W,C) -> patches (N*OH*OW, ksize*ksize*C), same dtype."""
    N, H, W, C = x.shape
    if pad > 0:
        x = jnp.pad(x, ((0, 0), (pad, pad), (pad, pad), (0, 0)))
    OH = (H + 2 * pad - ksize) // stride + 1
    OW = (W + 2 * pad - ksize) // stride + 1
    cols = []
    for dh in range(ksize):
        for dw in range(ksize):
            cols.append(x[:, dh:dh + stride * OH:stride,
                          dw:dw + stride * OW:stride, :])
    patches = jnp.concatenate(cols, axis=-1)
    return patches.reshape(N * OH * OW, ksize * ksize * C), OH, OW


@partial(jax.jit, static_argnames=("cout",))
def stem_fwd(conv1_w, x, *, cout):
    """First 3x3 conv of the backbone."""
    N = x.shape[0]
    patches, OH, OW = im2col(x.astype(jnp.bfloat16), 3, 1, 1)
    kp = conv1_w.shape[0]
    k = patches.shape[1]
    if kp != k:                                  # first conv: K=27 -> 32
        patches = jnp.pad(patches, ((0, 0), (0, kp - k)))
    out = conv_plain(patches, conv1_w)
    return out[:, :cout].reshape(N, OH, OW, cout)


@partial(jax.jit, static_argnames=("cin", "cout", "stride"))
def basic_block_fwd(p, x, *, cin, cout, stride):
    """One pre-activation BasicBlock in 3 fused pallas_calls."""
    N, H, W, _ = x.shape
    equal = (cin == cout)
    xa = bn_relu(x, p['bn1_g'], p['bn1_b'])               # bf16
    patches1, OH, OW = im2col(xa, 3, stride, 1)
    M = N * OH * OW
    h = conv_bnrelu(patches1, p['conv1_w'], p['bn2_g'], p['bn2_b'])
    h = h[:, :cout].reshape(N, OH, OW, cout)              # bf16
    patches2, _, _ = im2col(h, 3, 1, 1)
    if equal:
        res = x.reshape(M, cout)
        if cout < LANE:
            res = jnp.pad(res, ((0, 0), (0, LANE - cout)))
        out = conv_add(patches2, p['conv2_w'], res)
    else:
        psc = xa[:, ::stride, ::stride, :].reshape(M, cin)
        out = conv_add_sc(patches2, p['conv2_w'], psc, p['sc_w'])
    return out[:, :cout].reshape(N, OH, OW, cout)


@partial(jax.jit, static_argnames=("num_classes",))
def head_fwd(x, gamma, beta, fc_w, fc_b, *, num_classes):
    """BN + ReLU + global average pool + Linear, fused into one kernel."""
    N, H, W, C = x.shape
    pool = jnp.repeat(jnp.eye(N, dtype=jnp.float32), H * W, axis=1) / (H * W)
    emb, logits = pl.pallas_call(
        _head_kernel,
        out_shape=(jax.ShapeDtypeStruct((N, C), jnp.float32),
                   jax.ShapeDtypeStruct((N, LANE), jnp.float32)),
    )(x.reshape(N * H * W, C), pool, gamma.reshape(1, C), beta.reshape(1, C),
      fc_w, fc_b.reshape(1, LANE))
    return emb, logits[:, :num_classes]


# ---------------------------------------------------------------------------
# Parameter initialization (deterministic, matches the module's init rules)
# ---------------------------------------------------------------------------

class KeyGen:
    def __init__(self, seed):
        self.key = jax.random.PRNGKey(seed)

    def __call__(self):
        self.key, sub = jax.random.split(self.key)
        return sub


def make_specs(depth, widen):
    n = (depth - 4) // 6
    ch = [16, 16 * widen, 32 * widen, 64 * widen]

    def nb(cin, cout, stride):
        return [((cin if i == 0 else cout), cout, (stride if i == 0 else 1))
                for i in range(n)]

    return {
        'n': n, 'ch': ch,
        'backbone': (nb(ch[0], ch[1], 1) + nb(ch[1], ch[2], 2)
                     + nb(ch[2], ch[3], 2)),
        'aux1': nb(ch[1], ch[2], 2) + nb(ch[2], ch[3], 2),
        'aux2': nb(ch[2], ch[3], 2),
    }


def init_conv_w(kg, kh, kw, cin, cout):
    """Conv weight in kernel-ready layout: (round_up(kh*kw*cin,16), 128) bf16."""
    std = math.sqrt(2.0 / (kh * kw * cout))        # module's init rule
    w = std * jax.random.normal(kg(), (kh, kw, cin, cout), jnp.float32)
    k = kh * kw * cin
    kp = _rup(k, 16)
    w2 = jnp.pad(w.reshape(k, cout), ((0, kp - k), (0, LANE - cout)))
    return w2.astype(jnp.bfloat16)


def _bn_pad(c):
    g = jnp.pad(jnp.ones((c,), jnp.float32), (0, LANE - c)).reshape(1, LANE)
    b = jnp.zeros((1, LANE), jnp.float32)
    return g, b


def init_block_params(kg, cin, cout):
    g2, b2 = _bn_pad(cout)
    p = {'bn1_g': jnp.ones((cin,), jnp.float32),
         'bn1_b': jnp.zeros((cin,), jnp.float32),
         'conv1_w': init_conv_w(kg, 3, 3, cin, cout),
         'bn2_g': g2, 'bn2_b': b2,
         'conv2_w': init_conv_w(kg, 3, 3, cout, cout)}
    if cin != cout:
        p['sc_w'] = init_conv_w(kg, 1, 1, cin, cout)
    return p


def init_linear(kg, cin, cout):
    bound = 1.0 / math.sqrt(cin)
    w = jax.random.uniform(kg(), (cin, cout), jnp.float32, -bound, bound)
    w = jnp.pad(w, ((0, 0), (0, LANE - cout))).astype(jnp.bfloat16)
    b = jnp.zeros((LANE,), jnp.float32)            # nn.Linear bias is zeroed
    return w, b


def init_wrn_aux_params(kg, specs, num_classes):
    ch = specs['ch']
    p = {'conv1_w': init_conv_w(kg, 3, 3, 3, ch[0]),
         'backbone': [init_block_params(kg, cin, cout)
                      for (cin, cout, _) in specs['backbone']],
         'bn_g': jnp.ones((ch[3],), jnp.float32),
         'bn_b': jnp.zeros((ch[3],), jnp.float32)}
    p['fc_w'], p['fc_b'] = init_linear(kg, ch[3], num_classes)
    for name in ('aux1', 'aux2'):
        p[name] = [init_block_params(kg, cin, cout)
                   for (cin, cout, _) in specs[name]]
        p[name + '_bn_g'] = jnp.ones((ch[3],), jnp.float32)
        p[name + '_bn_b'] = jnp.zeros((ch[3],), jnp.float32)
        p[name + '_fc_w'], p[name + '_fc_b'] = init_linear(kg, ch[3],
                                                           num_classes)
    return p


# ---------------------------------------------------------------------------
# Forward pass (mirrors the PyTorch modules)
# ---------------------------------------------------------------------------

def wrn_aux_forward(params, x_nhwc, specs, num_classes):
    n = specs['n']
    out = stem_fwd(params['conv1_w'], x_nhwc, cout=specs['ch'][0])
    feats = []
    for i, (cin, cout, stride) in enumerate(specs['backbone']):
        out = basic_block_fwd(params['backbone'][i], out,
                              cin=cin, cout=cout, stride=stride)
        if i == n - 1 or i == 2 * n - 1:
            feats.append(out)
    emb, logit = head_fwd(out, params['bn_g'], params['bn_b'],
                          params['fc_w'], params['fc_b'],
                          num_classes=num_classes)

    ss_feats, ss_logits = [], []
    for j, name in enumerate(('aux1', 'aux2')):
        a = feats[j]
        for i, (cin, cout, stride) in enumerate(specs[name]):
            a = basic_block_fwd(params[name][i], a,
                                cin=cin, cout=cout, stride=stride)
        e, l = head_fwd(a, params[name + '_bn_g'], params[name + '_bn_b'],
                        params[name + '_fc_w'], params[name + '_fc_b'],
                        num_classes=num_classes)
        ss_feats.append(e)
        ss_logits.append(l)
    ss_feats.append(emb)
    ss_logits.append(logit)
    return ss_feats, ss_logits


def wideresnet_n_forward(all_params, x_nchw, specs, num_classes):
    x = jnp.transpose(x_nchw, (0, 2, 3, 1))        # NCHW -> NHWC
    embeddings, logits = [], []
    for params in all_params:
        f, l = wrn_aux_forward(params, x, specs, num_classes)
        embeddings.append(f)
        logits.append(l)
    return embeddings, logits


# ---------------------------------------------------------------------------

if __name__ == "__main__":
    DEPTH, WIDEN, NUM_CLASSES, NUMBER_NET = 16, 2, 100, 2
    specs = make_specs(DEPTH, WIDEN)
    kg = KeyGen(0)
    all_params = [init_wrn_aux_params(kg, specs, NUM_CLASSES)
                  for _ in range(NUMBER_NET)]

    # CIFAR-like input (spatial 32 so that avg_pool2d(., 8) acts on an 8x8 map)
    x = jax.random.normal(jax.random.PRNGKey(0), (2, 3, 32, 32), jnp.float32)

    embeddings, logits = wideresnet_n_forward(all_params, x, specs,
                                              NUM_CLASSES)
    jax.block_until_ready((embeddings, logits))

    # sanity: 2 nets, each with 3 embeddings (2,128) and 3 logits (2,100)
    assert len(embeddings) == NUMBER_NET and len(logits) == NUMBER_NET
    for e_list, l_list in zip(embeddings, logits):
        assert len(e_list) == 3 and len(l_list) == 3
        for e in e_list:
            assert e.shape == (2, specs['ch'][3])
        for l in l_list:
            assert l.shape == (2, NUM_CLASSES)
        for t in list(e_list) + list(l_list):
            assert bool(jnp.all(jnp.isfinite(t)))

    print("KERNEL_OK")
</pallas_src>

<mosaic_0001>
module attributes {stable_mosaic.version = 11 : i64} {
  func.func @_conv_plain_kernel(%arg0: i32, %arg1: memref<1024x32xbf16, #tpu.memory_space<vmem>>, %arg2: memref<32x128xbf16, #tpu.memory_space<vmem>>, %arg3: memref<1024x128xf32, #tpu.memory_space<vmem>>) attributes {dimension_semantics = [#tpu.dimension_semantics<parallel>], iteration_bounds = array<i64: 2>, scalar_prefetch = 0 : i64, scratch_operands = 0 : i64, tpu.core_type = #tpu.core_type<tc>, window_params = [{transform_indices = @transform_0, window_bounds = array<i64: 1024, 32>}, {pipeline_mode = #tpu.pipeline_mode<synchronous>, transform_indices = @transform_1, window_bounds = array<i64: 32, 128>}, {transform_indices = @transform_2, window_bounds = array<i64: 1024, 128>}]} {
    %c0 = arith.constant 0 : index
    %c0_0 = arith.constant 0 : index
    %0 = vector.load %arg1[%c0, %c0_0] : memref<1024x32xbf16, #tpu.memory_space<vmem>>, vector<1024x32xbf16>
    %c0_1 = arith.constant 0 : index
    %c0_2 = arith.constant 0 : index
    %1 = vector.load %arg2[%c0_1, %c0_2] : memref<32x128xbf16, #tpu.memory_space<vmem>>, vector<32x128xbf16>
    %cst = arith.constant dense<0.000000e+00> : vector<1024x128xf32>
    %2 = tpu.matmul %0, %1, %cst {dimension_numbers = #tpu.dot_dimension_numbers<[1], [0], [0], [1], [0, 0, 1, 1], [], []>} : vector<1024x32xbf16>, vector<32x128xbf16>, vector<1024x128xf32> -> vector<1024x128xf32>
    %c0_3 = arith.constant 0 : index
    %c0_4 = arith.constant 0 : index
    %3 = vector.load %arg3[%c0_3, %c0_4] : memref<1024x128xf32, #tpu.memory_space<vmem>>, vector<1024x128xf32>
    tpu.vector_store %arg3[%c0_3, %c0_4], %2 {strides = array<i32>} : memref<1024x128xf32, #tpu.memory_space<vmem>>, vector<1024x128xf32>,
    return
  }
  func.func @transform_0(%arg0: i32) -> (i32, i32) {
    %c0_i32 = arith.constant 0 : i32
    %c0_i32_0 = arith.constant 0 : i32
    return %arg0, %c0_i32 : i32, i32
  }
  func.func @transform_1(%arg0: i32) -> (i32, i32) {
    %c0_i32 = arith.constant 0 : i32
    %c0_i32_0 = arith.constant 0 : i32
    %c0_i32_1 = arith.constant 0 : i32
    return %c0_i32, %c0_i32_0 : i32, i32
  }
  func.func @transform_2(%arg0: i32) -> (i32, i32) {
    %c0_i32 = arith.constant 0 : i32
    %c0_i32_0 = arith.constant 0 : i32
    return %arg0, %c0_i32 : i32, i32
  }
}

</mosaic_0001>

<bundles_post_ra>
// kernel: stem_fwd.1
= control target key start
LH: loop header
LB: loop body
LE: loop exit
PB: predicated region body
PF: predicated region fallthrough
CT: control target
= control target key end

     0   :  { %s1974_s9 = smov 0   ;;  %s2261_s0 = inlined_call_operand.vmem [shape: bf16[2048,32], index: 0, kind: input, shape index: {}]   ;;  %s2262_s1 = inlined_call_operand.vmem [shape: bf16[32,128], index: 1, kind: input, shape index: {}]   ;;  %s2263_s2 = inlined_call_operand.vmem [shape: f32[2048,128], index: 2, kind: output, shape index: {}]  }
   0x1 LB: > { %s1534_s10 = sadd.s32 4294967295, %s1957_s9   ;;  %p1538_p0 = scmp.ge.s32.totalorder %s1957_s9, 1  ;;  %s1957_s9 = sphi %s1974_s9, %s12_s9  }
   0x2   : > { %p113_p1 = scmp.lt.s32.totalorder %s1957_s9, 3 }
   0x4   : > { %p114_p2 = pnand %p1538_p0, %p113_p1 }
   0x5   : > { %v1885_v0 = vld [vmem:[%s2262_s1] sm:$0xff] (!%p114_p2)   ;;  %s1539_s13 = sshll.u32 (!%p114_p2), %s1534_s10, 7  ;;  %v1886_v1 = vld [vmem:[%s2262_s1 + $0x8] sm:$0xff] (!%p114_p2)   ;;  %vm612_vm0 = vcmask (!%p114_p2), 261120  }
   0x6   : > { %117 = sbr.rel (%p114_p2) target bundleno = 355 (0x163), region = 28  ;;  %p136_p3 = scmp.lt.s32.totalorder (!%p114_p2), %s1539_s13, 255  ;;  %1741 = vmatprep.subr.bf16.mxu0 (!%p114_p2), %v1885_v0  ;;  %1873 = vmatprep.subr.bf16.mxu1 (!%p114_p2), %v1885_v0 }
   0x7   : > { %1742 = vmatpush3.bf16.msra.mxu0 (!%p114_p2), %v1885_v0  ;;  %1875 = vmatpush3.bf16.msra.mxu1 (!%p114_p2), %v1885_v0 }
   0x8   : > { %1743 = vmatprep.subr.bf16.mxu0 (!%p114_p2), %v1886_v1  ;;  %1874 = vmatprep.subr.bf16.mxu1 (!%p114_p2), %v1886_v1 }
   0xb   : > { %1744 = vmatpush3.bf16.msra.mxu0 (!%p114_p2), %v1886_v1  ;;  %1876 = vmatpush3.bf16.msra.mxu1 (!%p114_p2), %v1886_v1 }
   0xd   : > { %s2265_s13 = smov (!%p136_p3, %s1539_s13), 255 }
   0xe   : > { %s1540_s16 = sshll.u32 %s2265_s13, 2  ;;  %s1542_s20 = sshll.u32 %s2265_s13, 3 }
   0xf   : > { %s1994_s19 = scalar_lea.vmem %s2261_s0, %s1540_s16  ;;  %s2128_s23 = scalar_lea.vmem %s2263_s2, %s1542_s20 }
  0x10   : > { %v1887_v2 = vld [vmem:[%s1994_s19] sm:$0xff]   ;;  %v1889_v4 = vld [vmem:[%s1994_s19 + $0x8] sm:$0xff]   ;;  %v1891_v6 = vld [vmem:[%s1994_s19 + $0x10] sm:$0xff]  }
  0x11   : > { %v1888_v3 = vld [vmem:[%s1994_s19 + $0x100] sm:$0xff]   ;;  %1745 = vmatprep.mubr.msk.bf16.mxu0 %vm612_vm0, %v1887_v2  ;;  %v1890_v5 = vld [vmem:[%s1994_s19 + $0x108] sm:$0xff]   ;;  %v1892_v7 = vld [vmem:[%s1994_s19 + $0x110] sm:$0xff]  }
  0x12   : > { %1809 = vmatprep.mubr.msk.bf16.mxu1 %vm612_vm0, %v1888_v3  ;;  %1746 = vmatmul.mubr.msk.bf16.vlgmr.msra.gmra.mrb[0].mxu0 %vm612_vm0, %v1889_v4  ;;  %v1893_v8 = vld [vmem:[%s1994_s19 + $0x18] sm:$0xff]   ;;  %v1895_v10 = vld [vmem:[%s1994_s19 + $0x20] sm:$0xff]   ;;  %v1897_v12 = vld [vmem:[%s1994_s19 + $0x28] sm:$0xff]  }
  0x13   : > { %1810 = vmatmul.mubr.msk.bf16.vlgmr.msra.gmra.mrb[0].mxu1 %vm612_vm0, %v1890_v5  ;;  %1749 = vmatprep.mubr.msk.bf16.mxu0 %vm612_vm0, %v1891_v6  ;;  %v1894_v9 = vld [vmem:[%s1994_s19 + $0x118] sm:$0xff]   ;;  %v1896_v11 = vld [vmem:[%s1994_s19 + $0x120] sm:$0xff]   ;;  %v1898_v13 = vld [vmem:[%s1994_s19 + $0x128] sm:$0xff]  }
  0x14   : > { %1813 = vmatprep.mubr.msk.bf16.mxu1 %vm612_vm0, %v1892_v7  ;;  %v1899_v14 = vld [vmem:[%s1994_s19 + $0x30] sm:$0xff]   ;;  %v1901_v16 = vld [vmem:[%s1994_s19 + $0x38] sm:$0xff]   ;;  %v1903_v18 = vld [vmem:[%s1994_s19 + $0x40] sm:$0xff]  }
  0x15   : > { %v1900_v15 = vld [vmem:[%s1994_s19 + $0x130] sm:$0xff]   ;;  %v1902_v17 = vld [vmem:[%s1994_s19 + $0x138] sm:$0xff]   ;;  %v1904_v19 = vld [vmem:[%s1994_s19 + $0x140] sm:$0xff]  }
  0x16   : > { %v1905_v20 = vld [vmem:[%s1994_s19 + $0x48] sm:$0xff]   ;;  %v1907_v22 = vld [vmem:[%s1994_s19 + $0x50] sm:$0xff]   ;;  %v1909_v24 = vld [vmem:[%s1994_s19 + $0x58] sm:$0xff]  }
  0x17   : > { %v1906_v21 = vld [vmem:[%s1994_s19 + $0x148] sm:$0xff]   ;;  %v1908_v23 = vld [vmem:[%s1994_s19 + $0x150] sm:$0xff]   ;;  %v1910_v25 = vld [vmem:[%s1994_s19 + $0x158] sm:$0xff]  }
  0x18   : > { %v1911_v26 = vld [vmem:[%s1994_s19 + $0x60] sm:$0xff]   ;;  %v1913_v28 = vld [vmem:[%s1994_s19 + $0x68] sm:$0xff]   ;;  %v1915_v30 = vld [vmem:[%s1994_s19 + $0x70] sm:$0xff]  }
  0x19   : > { %v1912_v27 = vld [vmem:[%s1994_s19 + $0x160] sm:$0xff]   ;;  %v1914_v29 = vld [vmem:[%s1994_s19 + $0x168] sm:$0xff]   ;;  %v1916_v31 = vld [vmem:[%s1994_s19 + $0x170] sm:$0xff]  }
  0x1a   : > { %1750 = vmatmul.mubr.msk.bf16.gmra.mrb[4].mxu0 %vm612_vm0, %v1893_v8  ;;  %v1917_v32 = vld [vmem:[%s1994_s19 + $0x78] sm:$0xff]   ;;  %v1919_v34 = vld [vmem:[%s1994_s19 + $0x80] sm:$0xff]   ;;  %v1921_v36 = vld [vmem:[%s1994_s19 + $0x88] sm:$0xff]  }
  0x1b   : > { %1814 = vmatmul.mubr.msk.bf16.gmra.mrb[4].mxu1 %vm612_vm0, %v1894_v9  ;;  %1753 = vmatprep.mubr.msk.bf16.mxu0 %vm612_vm0, %v1895_v10  ;;  %v1918_v33 = vld [vmem:[%s1994_s19 + $0x178] sm:$0xff]   ;;  %v1920_v35 = vld [vmem:[%s1994_s19 + $0x180] sm:$0xff]   ;;  %v1922_v37 = vld [vmem:[%s1994_s19 + $0x188] sm:$0xff]  }
  0x1c   : > { %1817 = vmatprep.mubr.msk.bf16.mxu1 %vm612_vm0, %v1896_v11  ;;  %v1923_v38 = vld [vmem:[%s1994_s19 + $0x90] sm:$0xff]   ;;  %v1925_v40 = vld [vmem:[%s1994_s19 + $0x98] sm:$0xff]   ;;  %v1927_v42 = vld [vmem:[%s1994_s19 + $0xa0] sm:$0xff]  }
  0x1d   : > { %v1924_v39 = vld [vmem:[%s1994_s19 + $0x190] sm:$0xff]   ;;  %v1926_v41 = vld [vmem:[%s1994_s19 + $0x198] sm:$0xff]   ;;  %v1928_v43 = vld [vmem:[%s1994_s19 + $0x1a0] sm:$0xff]  }
  0x1e   : > { %v1929_v44 = vld [vmem:[%s1994_s19 + $0xa8] sm:$0xff]   ;;  %v1931_v46 = vld [vmem:[%s1994_s19 + $0xb0] sm:$0xff]   ;;  %v1933_v48 = vld [vmem:[%s1994_s19 + $0xb8] sm:$0xff]  }
  0x1f   : > { %v1930_v45 = vld [vmem:[%s1994_s19 + $0x1a8] sm:$0xff]   ;;  %v1932_v47 = vld [vmem:[%s1994_s19 + $0x1b0] sm:$0xff]   ;;  %v1934_v49 = vld [vmem:[%s1994_s19 + $0x1b8] sm:$0xff]  }
  0x20   : > { %v1935_v50 = vld [vmem:[%s1994_s19 + $0xc0] sm:$0xff]   ;;  %v1937_v52 = vld [vmem:[%s1994_s19 + $0xc8] sm:$0xff]   ;;  %v1939_v54 = vld [vmem:[%s1994_s19 + $0xd0] sm:$0xff]  }
  0x21   : > { %v1936_v51 = vld [vmem:[%s1994_s19 + $0x1c0] sm:$0xff]   ;;  %v1938_v53 = vld [vmem:[%s1994_s19 + $0x1c8] sm:$0xff]   ;;  %v1940_v55 = vld [vmem:[%s1994_s19 + $0x1d0] sm:$0xff]  }
  0x22   : > { %1754 = vmatmul.mubr.msk.bf16.gmra.mrb[8].mxu0 %vm612_vm0, %v1897_v12  ;;  %v1941_v56 = vld [vmem:[%s1994_s19 + $0xd8] sm:$0xff]   ;;  %v1943_v58 = vld [vmem:[%s1994_s19 + $0xe0] sm:$0xff]   ;;  %v1945_v60 = vld [vmem:[%s1994_s19 + $0xe8] sm:$0xff]  }
  0x23   : > { %1818 = vmatmul.mubr.msk.bf16.gmra.mrb[8].mxu1 %vm612_vm0, %v1898_v13  ;;  %1757 = vmatprep.mubr.msk.bf16.mxu0 %vm612_vm0, %v1899_v14  ;;  %v1942_v57 = vld [vmem:[%s1994_s19 + $0x1d8] sm:$0xff]   ;;  %v1944_v59 = vld [vmem:[%s1994_s19 + $0x1e0] sm:$0xff]   ;;  %v1946_v61 = vld [vmem:[%s1994_s19 + $0x1e8] sm:$0xff]  }
  0x24   : > { %1821 = vmatprep.mubr.msk.bf16.mxu1 %vm612_vm0, %v1900_v15  ;;  %v1947_v62 = vld [vmem:[%s1994_s19 + $0xf0] sm:$0xff]   ;;  %v1949_v0 = vld [vmem:[%s1994_s19 + $0xf8] sm:$0xff]  }
  0x25   : > { %v1948_v63 = vld [vmem:[%s1994_s19 + $0x1f0] sm:$0xff]   ;;  %v1950_v1 = vld [vmem:[%s1994_s19 + $0x1f8] sm:$0xff]  }
  0x2a   : > { %1758 = vmatmul.mubr.msk.bf16.gmra.mrb[12].mxu0 %vm612_vm0, %v1901_v16 }
  0x2b   : > { %1822 = vmatmul.mubr.msk.bf16.gmra.mrb[12].mxu1 %vm612_vm0, %v1902_v17  ;;  %1761 = vmatprep.mubr.msk.bf16.mxu0 %vm612_vm0, %v1903_v18 }
  0x2c   : > { %1825 = vmatprep.mubr.msk.bf16.mxu1 %vm612_vm0, %v1904_v19 }
  0x32   : > { %1762 = vmatmul.mubr.msk.bf16.gmra.mrb[16].mxu0 %vm612_vm0, %v1905_v20 }
  0x33   : > { %1826 = vmatmul.mubr.msk.bf16.gmra.mrb[16].mxu1 %vm612_vm0, %v1906_v21  ;;  %1765 = vmatprep.mubr.msk.bf16.mxu0 %vm612_vm0, %v1907_v22 }
  0x34   : > { %1829 = vmatprep.mubr.msk.bf16.mxu1 %vm612_vm0, %v1908_v23 }
  0x3a   : > { %1766 = vmatmul.mubr.msk.bf16.gmra.mrb[20].mxu0 %vm612_vm0, %v1909_v24 }
  0x3b   : > { %1830 = vmatmul.mubr.msk.bf16.gmra.mrb[20].mxu1 %vm612_vm0, %v1910_v25  ;;  %1769 = vmatprep.mubr.msk.bf16.mxu0 %vm612_vm0, %v1911_v26 }
  0x3c   : > { %1833 = vmatprep.mubr.msk.bf16.mxu1 %vm612_vm0, %v1912_v27 }
  0x42   : > { %1770 = vmatmul.mubr.msk.bf16.gmra.mrb[24].mxu0 %vm612_vm0, %v1913_v28 }
  0x43   : > { %1834 = vmatmul.mubr.msk.bf16.gmra.mrb[24].mxu1 %vm612_vm0, %v1914_v29  ;;  %1773 = vmatprep.mubr.msk.bf16.mxu0 %vm612_vm0, %v1915_v30 }
  0x44   : > { %1837 = vmatprep.mubr.msk.bf16.mxu1 %vm612_vm0, %v1916_v31 }
  0x4a   : > { %1774 = vmatmul.mubr.msk.bf16.gmra.mrb[28].mxu0 %vm612_vm0, %v1917_v32 }
  0x4b   : > { %1838 = vmatmul.mubr.msk.bf16.gmra.mrb[28].mxu1 %vm612_vm0, %v1918_v33  ;;  %1777 = vmatprep.mubr.msk.bf16.mxu0 %vm612_vm0, %v1919_v34 }
  0x4c   : > { %1841 = vmatprep.mubr.msk.bf16.mxu1 %vm612_vm0, %v1920_v35 }
  0x52   : > { %1778 = vmatmul.mubr.msk.bf16.gmra.mrb[32].mxu0 %vm612_vm0, %v1921_v36 }
  0x53   : > { %1842 = vmatmul.mubr.msk.bf16.gmra.mrb[32].mxu1 %vm612_vm0, %v1922_v37  ;;  %1781 = vmatprep.mubr.msk.bf16.mxu0 %vm612_vm0, %v1923_v38 }
  0x54   : > { %1845 = vmatprep.mubr.msk.bf16.mxu1 %vm612_vm0, %v1924_v39 }
  0x5a   : > { %1782 = vmatmul.mubr.msk.bf16.gmra.mrb[36].mxu0 %vm612_vm0, %v1925_v40 }
  0x5b   : > { %1846 = vmatmul.mubr.msk.bf16.gmra.mrb[36].mxu1 %vm612_vm0, %v1926_v41  ;;  %1785 = vmatprep.mubr.msk.bf16.mxu0 %vm612_vm0, %v1927_v42 }
  0x5c   : > { %1849 = vmatprep.mubr.msk.bf16.mxu1 %vm612_vm0, %v1928_v43 }
  0x62   : > { %1786 = vmatmul.mubr.msk.bf16.gmra.mrb[40].mxu0 %vm612_vm0, %v1929_v44 }
  0x63   : > { %1850 = vmatmul.mubr.msk.bf16.gmra.mrb[40].mxu1 %vm612_vm0, %v1930_v45  ;;  %1789 = vmatprep.mubr.msk.bf16.mxu0 %vm612_vm0, %v1931_v46 }
  0x64   : > { %1853 = vmatprep.mubr.msk.bf16.mxu1 %vm612_vm0, %v1932_v47 }
  0x6a   : > { %1790 = vmatmul.mubr.msk.bf16.gmra.mrb[44].mxu0 %vm612_vm0, %v1933_v48 }
  0x6b   : > { %1854 = vmatmul.mubr.msk.bf16.gmra.mrb[44].mxu1 %vm612_vm0, %v1934_v49  ;;  %1793 = vmatprep.mubr.msk.bf16.mxu0 %vm612_vm0, %v1935_v50 }
  0x6c   : > { %1857 = vmatprep.mubr.msk.bf16.mxu1 %vm612_vm0, %v1936_v51 }
  0x72   : > { %1794 = vmatmul.mubr.msk.bf16.gmra.mrb[48].mxu0 %vm612_vm0, %v1937_v52 }
  0x73   : > { %1858 = vmatmul.mubr.msk.bf16.gmra.mrb[48].mxu1 %vm612_vm0, %v1938_v53  ;;  %1797 = vmatprep.mubr.msk.bf16.mxu0 %vm612_vm0, %v1939_v54 }
  0x74   : > { %1861 = vmatprep.mubr.msk.bf16.mxu1 %vm612_vm0, %v1940_v55 }
  0x7a   : > { %1798 = vmatmul.mubr.msk.bf16.gmra.mrb[52].mxu0 %vm612_vm0, %v1941_v56 }
  0x7b   : > { %1862 = vmatmul.mubr.msk.bf16.gmra.mrb[52].mxu1 %vm612_vm0, %v1942_v57  ;;  %1801 = vmatprep.mubr.msk.bf16.mxu0 %vm612_vm0, %v1943_v58 }
  0x7c   : > { %1865 = vmatprep.mubr.msk.bf16.mxu1 %vm612_vm0, %v1944_v59 }
  0x82   : > { %1802 = vmatmul.mubr.msk.bf16.gmra.mrb[56].mxu0 %vm612_vm0, %v1945_v60 }
  0x83   : > { %1866 = vmatmul.mubr.msk.bf16.gmra.mrb[56].mxu1 %vm612_vm0, %v1946_v61  ;;  %1805 = vmatprep.mubr.msk.bf16.mxu0 %vm612_vm0, %v1947_v62 }
  0x84   : > { %1869 = vmatprep.mubr.msk.bf16.mxu1 %vm612_vm0, %v1948_v63 }
  0x8a   : > { %1806 = vmatmul.mubr.msk.bf16.gmra.mrb[60].mxu0 %vm612_vm0, %v1949_v0 }
  0x8b   : > { %1870 = vmatmul.mubr.msk.bf16.gmra.mrb[60].mxu1 %vm612_vm0, %v1950_v1 }
  0xe5   : > { %v1747_v2 = vpop.f32.mrb[0].mxu0 }
  0xe6   : > { %1352 = vst [vmem:[%s2128_s23 + $0x10] sm:$0xff] %v1747_v2  ;;  %v1811_v3 = vpop.f32.mrb[0].mxu1  ;;  %v839_v4 = vpop.f32.mrb[1].mxu0 }
  0xe7   : > { %1416 = vst [vmem:[%s2128_s23 + $0x210] sm:$0xff] %v1811_v3  ;;  %1350 = vst [vmem:[%s2128_s23] sm:$0xff] %v839_v4  ;;  %v1095_v5 = vpop.f32.mrb[1].mxu1  ;;  %v1748_v6 = vpop.f32.mrb[2].mxu0 }
  0xe8   : > { %1414 = vst [vmem:[%s2128_s23 + $0x200] sm:$0xff] %v1095_v5  ;;  %1353 = vst [vmem:[%s2128_s23 + $0x18] sm:$0xff] %v1748_v6  ;;  %v1812_v7 = vpop.f32.mrb[2].mxu1  ;;  %v842_v8 = vpop.f32.mrb[3].mxu0 }
  0xe9   : > { %1417 = vst [vmem:[%s2128_s23 + $0x218] sm:$0xff] %v1812_v7  ;;  %1351 = vst [vmem:[%s2128_s23 + $0x8] sm:$0xff] %v842_v8  ;;  %v1098_v9 = vpop.f32.mrb[3].mxu1 }
  0xea   : > { %1415 = vst [vmem:[%s2128_s23 + $0x208] sm:$0xff] %v1098_v9 }
  0xed   : > { %v1751_v10 = vpop.f32.mrb[4].mxu0 }
  0xee   : > { %1356 = vst [vmem:[%s2128_s23 + $0x30] sm:$0xff] %v1751_v10  ;;  %v1815_v11 = vpop.f32.mrb[4].mxu1  ;;  %v855_v12 = vpop.f32.mrb[5].mxu0 }
  0xef   : > { %1420 = vst [vmem:[%s2128_s23 + $0x230] sm:$0xff] %v1815_v11  ;;  %1354 = vst [vmem:[%s2128_s23 + $0x20] sm:$0xff] %v855_v12  ;;  %v1111_v13 = vpop.f32.mrb[5].mxu1  ;;  %v1752_v14 = vpop.f32.mrb[6].mxu0 }
  0xf0   : > { %1418 = vst [vmem:[%s2128_s23 + $0x220] sm:$0xff] %v1111_v13  ;;  %1357 = vst [vmem:[%s2128_s23 + $0x38] sm:$0xff] %v1752_v14  ;;  %v1816_v15 = vpop.f32.mrb[6].mxu1  ;;  %v858_v16 = vpop.f32.mrb[7].mxu0 }
  0xf1   : > { %1421 = vst [vmem:[%s2128_s23 + $0x238] sm:$0xff] %v1816_v15  ;;  %1355 = vst [vmem:[%s2128_s23 + $0x28] sm:$0xff] %v858_v16  ;;  %v1114_v17 = vpop.f32.mrb[7].mxu1 }
  0xf2   : > { %1419 = vst [vmem:[%s2128_s23 + $0x228] sm:$0xff] %v1114_v17 }
  0xf5   : > { %v1755_v18 = vpop.f32.mrb[8].mxu0 }
  0xf6   : > { %1360 = vst [vmem:[%s2128_s23 + $0x50] sm:$0xff] %v1755_v18  ;;  %v1819_v19 = vpop.f32.mrb[8].mxu1  ;;  %v871_v20 = vpop.f32.mrb[9].mxu0 }
  0xf7   : > { %1424 = vst [vmem:[%s2128_s23 + $0x250] sm:$0xff] %v1819_v19  ;;  %1358 = vst [vmem:[%s2128_s23 + $0x40] sm:$0xff] %v871_v20  ;;  %v1127_v21 = vpop.f32.mrb[9].mxu1  ;;  %v1756_v22 = vpop.f32.mrb[10].mxu0 }
  0xf8   : > { %1422 = vst [vmem:[%s2128_s23 + $0x240] sm:$0xff] %v1127_v21  ;;  %1361 = vst [vmem:[%s2128_s23 + $0x58] sm:$0xff] %v1756_v22  ;;  %v1820_v23 = vpop.f32.mrb[10].mxu1  ;;  %v874_v24 = vpop.f32.mrb[11].mxu0 }
  0xf9   : > { %1425 = vst [vmem:[%s2128_s23 + $0x258] sm:$0xff] %v1820_v23  ;;  %1359 = vst [vmem:[%s2128_s23 + $0x48] sm:$0xff] %v874_v24  ;;  %v1130_v25 = vpop.f32.mrb[11].mxu1 }
  0xfa   : > { %1423 = vst [vmem:[%s2128_s23 + $0x248] sm:$0xff] %v1130_v25 }
  0xfd   : > { %v1759_v26 = vpop.f32.mrb[12].mxu0 }
  0xfe   : > { %1364 = vst [vmem:[%s2128_s23 + $0x70] sm:$0xff] %v1759_v26  ;;  %v1823_v27 = vpop.f32.mrb[12].mxu1  ;;  %v887_v28 = vpop.f32.mrb[13].mxu0 }
  0xff   : > { %1428 = vst [vmem:[%s2128_s23 + $0x270] sm:$0xff] %v1823_v27  ;;  %1362 = vst [vmem:[%s2128_s23 + $0x60] sm:$0xff] %v887_v28  ;;  %v1143_v29 = vpop.f32.mrb[13].mxu1  ;;  %v1760_v30 = vpop.f32.mrb[14].mxu0 }
 0x100   : > { %1426 = vst [vmem:[%s2128_s23 + $0x260] sm:$0xff] %v1143_v29  ;;  %1365 = vst [vmem:[%s2128_s23 + $0x78] sm:$0xff] %v1760_v30  ;;  %v1824_v31 = vpop.f32.mrb[14].mxu1  ;;  %v890_v32 = vpop.f32.mrb[15].mxu0 }
 0x101   : > { %1429 = vst [vmem:[%s2128_s23 + $0x278] sm:$0xff] %v1824_v31  ;;  %1363 = vst [vmem:[%s2128_s23 + $0x68] sm:$0xff] %v890_v32  ;;  %v1146_v33 = vpop.f32.mrb[15].mxu1 }
 0x102   : > { %1427 = vst [vmem:[%s2128_s23 + $0x268] sm:$0xff] %v1146_v33 }
 0x105   : > { %v1763_v34 = vpop.f32.mrb[16].mxu0 }
 0x106   : > { %1368 = vst [vmem:[%s2128_s23 + $0x90] sm:$0xff] %v1763_v34  ;;  %v1827_v35 = vpop.f32.mrb[16].mxu1  ;;  %v903_v36 = vpop.f32.mrb[17].mxu0 }
 0x107   : > { %1432 = vst [vmem:[%s2128_s23 + $0x290] sm:$0xff] %v1827_v35  ;;  %1366 = vst [vmem:[%s2128_s23 + $0x80] sm:$0xff] %v903_v36  ;;  %v1159_v37 = vpop.f32.mrb[17].mxu1  ;;  %v1764_v38 = vpop.f32.mrb[18].mxu0 }
 0x108   : > { %1430 = vst [vmem:[%s2128_s23 + $0x280] sm:$0xff] %v1159_v37  ;;  %1369 = vst [vmem:[%s2128_s23 + $0x98] sm:$0xff] %v1764_v38  ;;  %v1828_v39 = vpop.f32.mrb[18].mxu1  ;;  %v906_v40 = vpop.f32.mrb[19].mxu0 }
 0x109   : > { %1433 = vst [vmem:[%s2128_s23 + $0x298] sm:$0xff] %v1828_v39  ;;  %1367 = vst [vmem:[%s2128_s23 + $0x88] sm:$0xff] %v906_v40  ;;  %v1162_v41 = vpop.f32.mrb[19].mxu1 }
 0x10a   : > { %1431 = vst [vmem:[%s2128_s23 + $0x288] sm:$0xff] %v1162_v41 }
 0x10d   : > { %v1767_v42 = vpop.f32.mrb[20].mxu0 }
 0x10e   : > { %1372 = vst [vmem:[%s2128_s23 + $0xb0] sm:$0xff] %v1767_v42  ;;  %v1831_v43 = vpop.f32.mrb[20].mxu1  ;;  %v919_v44 = vpop.f32.mrb[21].mxu0 }
 0x10f   : > { %1436 = vst [vmem:[%s2128_s23 + $0x2b0] sm:$0xff] %v1831_v43  ;;  %1370 = vst [vmem:[%s2128_s23 + $0xa0] sm:$0xff] %v919_v44  ;;  %v1175_v45 = vpop.f32.mrb[21].mxu1  ;;  %v1768_v46 = vpop.f32.mrb[22].mxu0 }
 0x110   : > { %1434 = vst [vmem:[%s2128_s23 + $0x2a0] sm:$0xff] %v1175_v45  ;;  %1373 = vst [vmem:[%s2128_s23 + $0xb8] sm:$0xff] %v1768_v46  ;;  %v1832_v47 = vpop.f32.mrb[22].mxu1  ;;  %v922_v48 = vpop.f32.mrb[23].mxu0 }
 0x111   : > { %1437 = vst [vmem:[%s2128_s23 + $0x2b8] sm:$0xff] %v1832_v47  ;;  %1371 = vst [vmem:[%s2128_s23 + $0xa8] sm:$0xff] %v922_v48  ;;  %v1178_v49 = vpop.f32.mrb[23].mxu1 }
 0x112   : > { %1435 = vst [vmem:[%s2128_s23 + $0x2a8] sm:$0xff] %v1178_v49 }
 0x115   : > { %v1771_v50 = vpop.f32.mrb[24].mxu0 }
 0x116   : > { %1376 = vst [vmem:[%s2128_s23 + $0xd0] sm:$0xff] %v1771_v50  ;;  %v1835_v51 = vpop.f32.mrb[24].mxu1  ;;  %v935_v52 = vpop.f32.mrb[25].mxu0 }
 0x117   : > { %1440 = vst [vmem:[%s2128_s23 + $0x2d0] sm:$0xff] %v1835_v51  ;;  %1374 = vst [vmem:[%s2128_s23 + $0xc0] sm:$0xff] %v935_v52  ;;  %v1191_v53 = vpop.f32.mrb[25].mxu1  ;;  %v1772_v54 = vpop.f32.mrb[26].mxu0 }
 0x118   : > { %1438 = vst [vmem:[%s2128_s23 + $0x2c0] sm:$0xff] %v1191_v53  ;;  %1377 = vst [vmem:[%s2128_s23 + $0xd8] sm:$0xff] %v1772_v54  ;;  %v1836_v55 = vpop.f32.mrb[26].mxu1  ;;  %v938_v56 = vpop.f32.mrb[27].mxu0 }
 0x119   : > { %1441 = vst [vmem:[%s2128_s23 + $0x2d8] sm:$0xff] %v1836_v55  ;;  %1375 = vst [vmem:[%s2128_s23 + $0xc8] sm:$0xff] %v938_v56  ;;  %v1194_v57 = vpop.f32.mrb[27].mxu1 }
 0x11a   : > { %1439 = vst [vmem:[%s2128_s23 + $0x2c8] sm:$0xff] %v1194_v57 }
 0x11d   : > { %v1775_v58 = vpop.f32.mrb[28].mxu0 }
 0x11e   : > { %1380 = vst [vmem:[%s2128_s23 + $0xf0] sm:$0xff] %v1775_v58  ;;  %v1839_v59 = vpop.f32.mrb[28].mxu1  ;;  %v951_v60 = vpop.f32.mrb[29].mxu0 }
 0x11f   : > { %1444 = vst [vmem:[%s2128_s23 + $0x2f0] sm:$0xff] %v1839_v59  ;;  %1378 = vst [vmem:[%s2128_s23 + $0xe0] sm:$0xff] %v951_v60  ;;  %v1207_v61 = vpop.f32.mrb[29].mxu1  ;;  %v1776_v62 = vpop.f32.mrb[30].mxu0 }
 0x120   : > { %1442 = vst [vmem:[%s2128_s23 + $0x2e0] sm:$0xff] %v1207_v61  ;;  %1381 = vst [vmem:[%s2128_s23 + $0xf8] sm:$0xff] %v1776_v62  ;;  %v1840_v63 = vpop.f32.mrb[30].mxu1  ;;  %v954_v0 = vpop.f32.mrb[31].mxu0 }
 0x121   : > { %1445 = vst [vmem:[%s2128_s23 + $0x2f8] sm:$0xff] %v1840_v63  ;;  %1379 = vst [vmem:[%s2128_s23 + $0xe8] sm:$0xff] %v954_v0  ;;  %v1210_v1 = vpop.f32.mrb[31].mxu1 }
 0x122   : > { %1443 = vst [vmem:[%s2128_s23 + $0x2e8] sm:$0xff] %v1210_v1 }
 0x125   : > { %v1779_v2 = vpop.f32.mrb[32].mxu0 }
 0x126   : > { %1384 = vst [vmem:[%s2128_s23 + $0x110] sm:$0xff] %v1779_v2  ;;  %v1843_v3 = vpop.f32.mrb[32].mxu1  ;;  %v967_v4 = vpop.f32.mrb[33].mxu0 }
 0x127   : > { %1448 = vst [vmem:[%s2128_s23 + $0x310] sm:$0xff] %v1843_v3  ;;  %1382 = vst [vmem:[%s2128_s23 + $0x100] sm:$0xff] %v967_v4  ;;  %v1223_v5 = vpop.f32.mrb[33].mxu1  ;;  %v1780_v6 = vpop.f32.mrb[34].mxu0 }
 0x128   : > { %1446 = vst [vmem:[%s2128_s23 + $0x300] sm:$0xff] %v1223_v5  ;;  %1385 = vst [vmem:[%s2128_s23 + $0x118] sm:$0xff] %v1780_v6  ;;  %v1844_v7 = vpop.f32.mrb[34].mxu1  ;;  %v970_v8 = vpop.f32.mrb[35].mxu0 }
 0x129   : > { %1449 = vst [vmem:[%s2128_s23 + $0x318] sm:$0xff] %v1844_v7  ;;  %1383 = vst [vmem:[%s2128_s23 + $0x108] sm:$0xff] %v970_v8  ;;  %v1226_v9 = vpop.f32.mrb[35].mxu1 }
 0x12a   : > { %1447 = vst [vmem:[%s2128_s23 + $0x308] sm:$0xff] %v1226_v9 }
 0x12d   : > { %v1783_v10 = vpop.f32.mrb[36].mxu0 }
 0x12e   : > { %1388 = vst [vmem:[%s2128_s23 + $0x130] sm:$0xff] %v1783_v10  ;;  %v1847_v11 = vpop.f32.mrb[36].mxu1  ;;  %v983_v12 = vpop.f32.mrb[37].mxu0 }
 0x12f   : > { %1452 = vst [vmem:[%s2128_s23 + $0x330] sm:$0xff] %v1847_v11  ;;  %1386 = vst [vmem:[%s2128_s23 + $0x120] sm:$0xff] %v983_v12  ;;  %v1239_v13 = vpop.f32.mrb[37].mxu1  ;;  %v1784_v14 = vpop.f32.mrb[38].mxu0 }
 0x130   : > { %1450 = vst [vmem:[%s2128_s23 + $0x320] sm:$0xff] %v1239_v13  ;;  %1389 = vst [vmem:[%s2128_s23 + $0x138] sm:$0xff] %v1784_v14  ;;  %v1848_v15 = vpop.f32.mrb[38].mxu1  ;;  %v986_v16 = vpop.f32.mrb[39].mxu0 }
 0x131   : > { %1453 = vst [vmem:[%s2128_s23 + $0x338] sm:$0xff] %v1848_v15  ;;  %1387 = vst [vmem:[%s2128_s23 + $0x128] sm:$0xff] %v986_v16  ;;  %v1242_v17 = vpop.f32.mrb[39].mxu1 }
 0x132   : > { %1451 = vst [vmem:[%s2128_s23 + $0x328] sm:$0xff] %v1242_v17 }
 0x135   : > { %v1787_v18 = vpop.f32.mrb[40].mxu0 }
 0x136   : > { %1392 = vst [vmem:[%s2128_s23 + $0x150] sm:$0xff] %v1787_v18  ;;  %v1851_v19 = vpop.f32.mrb[40].mxu1  ;;  %v999_v20 = vpop.f32.mrb[41].mxu0 }
 0x137   : > { %1456 = vst [vmem:[%s2128_s23 + $0x350] sm:$0xff] %v1851_v19  ;;  %1390 = vst [vmem:[%s2128_s23 + $0x140] sm:$0xff] %v999_v20  ;;  %v1255_v21 = vpop.f32.mrb[41].mxu1  ;;  %v1788_v22 = vpop.f32.mrb[42].mxu0 }
 0x138   : > { %1454 = vst [vmem:[%s2128_s23 + $0x340] sm:$0xff] %v1255_v21  ;;  %1393 = vst [vmem:[%s2128_s23 + $0x158] sm:$0xff] %v1788_v22  ;;  %v1852_v23 = vpop.f32.mrb[42].mxu1  ;;  %v1002_v24 = vpop.f32.mrb[43].mxu0 }
 0x139   : > { %1457 = vst [vmem:[%s2128_s23 + $0x358] sm:$0xff] %v1852_v23  ;;  %1391 = vst [vmem:[%s2128_s23 + $0x148] sm:$0xff] %v1002_v24  ;;  %v1258_v25 = vpop.f32.mrb[43].mxu1 }
 0x13a   : > { %1455 = vst [vmem:[%s2128_s23 + $0x348] sm:$0xff] %v1258_v25 }
 0x13d   : > { %v1791_v26 = vpop.f32.mrb[44].mxu0 }
 0x13e   : > { %1396 = vst [vmem:[%s2128_s23 + $0x170] sm:$0xff] %v1791_v26  ;;  %v1855_v27 = vpop.f32.mrb[44].mxu1  ;;  %v1015_v28 = vpop.f32.mrb[45].mxu0 }
 0x13f   : > { %1460 = vst [vmem:[%s2128_s23 + $0x370] sm:$0xff] %v1855_v27  ;;  %1394 = vst [vmem:[%s2128_s23 + $0x160] sm:$0xff] %v1015_v28  ;;  %v1271_v29 = vpop.f32.mrb[45].mxu1  ;;  %v1792_v30 = vpop.f32.mrb[46].mxu0 }
 0x140   : > { %1458 = vst [vmem:[%s2128_s23 + $0x360] sm:$0xff] %v1271_v29  ;;  %1397 = vst [vmem:[%s2128_s23 + $0x178] sm:$0xff] %v1792_v30  ;;  %v1856_v31 = vpop.f32.mrb[46].mxu1  ;;  %v1018_v32 = vpop.f32.mrb[47].mxu0 }
 0x141   : > { %1461 = vst [vmem:[%s2128_s23 + $0x378] sm:$0xff] %v1856_v31  ;;  %1395 = vst [vmem:[%s2128_s23 + $0x168] sm:$0xff] %v1018_v32  ;;  %v1274_v33 = vpop.f32.mrb[47].mxu1 }
 0x142   : > { %1459 = vst [vmem:[%s2128_s23 + $0x368] sm:$0xff] %v1274_v33 }
 0x145   : > { %v1795_v34 = vpop.f32.mrb[48].mxu0 }
 0x146   : > { %1400 = vst [vmem:[%s2128_s23 + $0x190] sm:$0xff] %v1795_v34  ;;  %v1859_v35 = vpop.f32.mrb[48].mxu1  ;;  %v1031_v36 = vpop.f32.mrb[49].mxu0 }
 0x147   : > { %1464 = vst [vmem:[%s2128_s23 + $0x390] sm:$0xff] %v1859_v35  ;;  %1398 = vst [vmem:[%s2128_s23 + $0x180] sm:$0xff] %v1031_v36  ;;  %v1287_v37 = vpop.f32.mrb[49].mxu1  ;;  %v1796_v38 = vpop.f32.mrb[50].mxu0 }
 0x148   : > { %1462 = vst [vmem:[%s2128_s23 + $0x380] sm:$0xff] %v1287_v37  ;;  %1401 = vst [vmem:[%s2128_s23 + $0x198] sm:$0xff] %v1796_v38  ;;  %v1860_v39 = vpop.f32.mrb[50].mxu1  ;;  %v1034_v40 = vpop.f32.mrb[51].mxu0 }
 0x149   : > { %1465 = vst [vmem:[%s2128_s23 + $0x398] sm:$0xff] %v1860_v39  ;;  %1399 = vst [vmem:[%s2128_s23 + $0x188] sm:$0xff] %v1034_v40  ;;  %v1290_v41 = vpop.f32.mrb[51].mxu1 }
 0x14a   : > { %1463 = vst [vmem:[%s2128_s23 + $0x388] sm:$0xff] %v1290_v41 }
 0x14d   : > { %v1799_v42 = vpop.f32.mrb[52].mxu0 }
 0x14e   : > { %1404 = vst [vmem:[%s2128_s23 + $0x1b0] sm:$0xff] %v1799_v42  ;;  %v1863_v43 = vpop.f32.mrb[52].mxu1  ;;  %v1047_v44 = vpop.f32.mrb[53].mxu0 }
 0x14f   : > { %1468 = vst [vmem:[%s2128_s23 + $0x3b0] sm:$0xff] %v1863_v43  ;;  %1402 = vst [vmem:[%s2128_s23 + $0x1a0] sm:$0xff] %v1047_v44  ;;  %v1303_v45 = vpop.f32.mrb[53].mxu1  ;;  %v1800_v46 = vpop.f32.mrb[54].mxu0 }
 0x150   : > { %1466 = vst [vmem:[%s2128_s23 + $0x3a0] sm:$0xff] %v1303_v45  ;;  %1405 = vst [vmem:[%s2128_s23 + $0x1b8] sm:$0xff] %v1800_v46  ;;  %v1864_v47 = vpop.f32.mrb[54].mxu1  ;;  %v1050_v48 = vpop.f32.mrb[55].mxu0 }
 0x151   : > { %1469 = vst [vmem:[%s2128_s23 + $0x3b8] sm:$0xff] %v1864_v47  ;;  %1403 = vst [vmem:[%s2128_s23 + $0x1a8] sm:$0xff] %v1050_v48  ;;  %v1306_v49 = vpop.f32.mrb[55].mxu1 }
 0x152   : > { %1467 = vst [vmem:[%s2128_s23 + $0x3a8] sm:$0xff] %v1306_v49 }
 0x155   : > { %v1803_v50 = vpop.f32.mrb[56].mxu0 }
 0x156   : > { %1408 = vst [vmem:[%s2128_s23 + $0x1d0] sm:$0xff] %v1803_v50  ;;  %v1867_v51 = vpop.f32.mrb[56].mxu1  ;;  %v1063_v52 = vpop.f32.mrb[57].mxu0 }
 0x157   : > { %1472 = vst [vmem:[%s2128_s23 + $0x3d0] sm:$0xff] %v1867_v51  ;;  %1406 = vst [vmem:[%s2128_s23 + $0x1c0] sm:$0xff] %v1063_v52  ;;  %v1319_v53 = vpop.f32.mrb[57].mxu1  ;;  %v1804_v54 = vpop.f32.mrb[58].mxu0 }
 0x158   : > { %1470 = vst [vmem:[%s2128_s23 + $0x3c0] sm:$0xff] %v1319_v53  ;;  %1409 = vst [vmem:[%s2128_s23 + $0x1d8] sm:$0xff] %v1804_v54  ;;  %v1868_v55 = vpop.f32.mrb[58].mxu1  ;;  %v1066_v56 = vpop.f32.mrb[59].mxu0 }
 0x159   : > { %1473 = vst [vmem:[%s2128_s23 + $0x3d8] sm:$0xff] %v1868_v55  ;;  %1407 = vst [vmem:[%s2128_s23 + $0x1c8] sm:$0xff] %v1066_v56  ;;  %v1322_v57 = vpop.f32.mrb[59].mxu1 }
 0x15a   : > { %1471 = vst [vmem:[%s2128_s23 + $0x3c8] sm:$0xff] %v1322_v57 }
 0x15d   : > { %v1807_v58 = vpop.f32.mrb[60].mxu0 }
 0x15e   : > { %1412 = vst [vmem:[%s2128_s23 + $0x1f0] sm:$0xff] %v1807_v58  ;;  %v1871_v59 = vpop.f32.mrb[60].mxu1  ;;  %v1079_v60 = vpop.f32.mrb[61].mxu0 }
 0x15f   : > { %1476 = vst [vmem:[%s2128_s23 + $0x3f0] sm:$0xff] %v1871_v59  ;;  %1410 = vst [vmem:[%s2128_s23 + $0x1e0] sm:$0xff] %v1079_v60  ;;  %v1335_v61 = vpop.f32.mrb[61].mxu1  ;;  %v1808_v62 = vpop.f32.mrb[62].mxu0 }
 0x160   : > { %1474 = vst [vmem:[%s2128_s23 + $0x3e0] sm:$0xff] %v1335_v61  ;;  %1413 = vst [vmem:[%s2128_s23 + $0x1f8] sm:$0xff] %v1808_v62  ;;  %v1872_v63 = vpop.f32.mrb[62].mxu1  ;;  %v1082_v0 = vpop.f32.mrb[63].mxu0 }
 0x161   : > { %1477 = vst [vmem:[%s2128_s23 + $0x3f8] sm:$0xff] %v1872_v63  ;;  %1411 = vst [vmem:[%s2128_s23 + $0x1e8] sm:$0xff] %v1082_v0  ;;  %v1338_v1 = vpop.f32.mrb[63].mxu1 }
 0x162   : > { %1475 = vst [vmem:[%s2128_s23 + $0x3e8] sm:$0xff] %v1338_v1 }
 0x163 PF: > { %s12_s9 = sadd.s32 1, %s1957_s9  }
 0x164   : > { %p9_p4 = scmp.ge.s32.totalorder %s12_s9, 4  }
 0x166   :  { %11 = sbr.rel (!%p9_p4) target bundleno = 1 (0x1), region = 58 }

</bundles_post_ra>
